<compile_context>
chip_gen: v5e
topology: v5e:2x2
jax: 0.10.0
libtpu: 0.0.40
codegen_flags: <defaults>
</compile_context>

<pallas_src>
import jax
import jax.numpy as jnp
from jax.experimental import pallas as pl
from jax.experimental.pallas import tpu as pltpu

_LANE = 128
_LANE_TARGET = 16384            # max lane width of the 1D-refactorized view
_TILE_BYTES = 4 * 1024 * 1024   # ~4 MiB per VMEM buffer (x4 when double-buffered)
_VMEM_LIMIT = 32 * 1024 * 1024  # 16 MiB of pipelined buffers + headroom;
                                # <= v7x 64 MiB physical, raises v5e's 16 MiB default


def _copy_kernel(x_ref, o_ref):
    # Pure lane-dense tile copy; no reshape / relayout inside the kernel.
    o_ref[...] = x_ref[...]


def _tile(dim, align, target):
    """Tile size <= min(dim, target) that is a multiple of `align`,
    or the full extent when dim < align (a full-dim block is always legal)."""
    if dim <= align:
        return dim
    target = max(align, (target // align) * align)
    return min((dim // align) * align, target)


def _widest_lane_divisor(total):
    """Largest multiple of 128 dividing `total`, capped at _LANE_TARGET (or None)."""
    if total % _LANE != 0:
        return None
    m = total // _LANE
    best = 1
    for d in range(1, min(m, _LANE_TARGET // _LANE) + 1):
        if m % d == 0:
            best = d
    return _LANE * best


def flatten_pallas(x, full=False):
    """Pallas equivalent of Flatten(full).forward(x)."""
    N = x.shape[0]
    F = 1
    for d in x.shape[1:]:
        F *= d
    total = N * F

    itemsize = jnp.dtype(x.dtype).itemsize
    sub = max(8, 32 // itemsize)  # sublane alignment: f32 -> 8, bf16 -> 16, int8 -> 32

    cols = _widest_lane_divisor(total)
    if cols is not None:
        # 1D re-factorization: contiguous data viewed as (rows, cols) with
        # cols a multiple of 128 -> unmasked, fully dense loads/stores and a
        # long parallel grid axis independent of N / F.
        rows = total // cols
    else:
        # Ragged element count: tile the (N, F) view; Pallas masks the
        # partial edge blocks of a cdiv grid, so this stays correct and
        # never falls back to a single giant block.
        rows, cols = N, F

    view = x.reshape(rows, cols)  # metadata-only reshape in the wrapper

    tc = _tile(cols, _LANE, _LANE_TARGET)
    row_target = max(1, _TILE_BYTES // max(1, tc * itemsize))
    tm = _tile(rows, sub, row_target)
    grid = (pl.cdiv(rows, tm), pl.cdiv(cols, tc))

    out = pl.pallas_call(
        _copy_kernel,
        out_shape=jax.ShapeDtypeStruct((rows, cols), x.dtype),
        grid=grid,
        in_specs=[pl.BlockSpec((tm, tc), lambda i, j: (i, j))],
        out_specs=pl.BlockSpec((tm, tc), lambda i, j: (i, j)),
        input_output_aliases={0: 0},  # output aliases the reshaped input under jit
        compiler_params=pltpu.CompilerParams(
            dimension_semantics=("parallel", "parallel"),
            vmem_limit_bytes=_VMEM_LIMIT),
    )(view)

    # Final shape is another metadata-only reshape.
    return out.reshape(-1) if full else out.reshape(N, F)


if __name__ == "__main__":
    key = jax.random.PRNGKey(0)
    N, C, H, W = 2, 4, 16, 16
    x = jax.random.normal(key, (N, C, H, W), dtype=jnp.float32)

    # Reference results (computed up-front).
    ref = x.reshape(N, -1)
    ref_full = x.reshape(-1)

    # full=False : (N, C*H*W)
    y = flatten_pallas(x, full=False)
    jax.block_until_ready(y)
    assert y.shape == (N, C * H * W)
    assert jnp.array_equal(y, ref)

    # full=True : (N*C*H*W,)
    y_full = flatten_pallas(x, full=True)
    jax.block_until_ready(y_full)
    assert y_full.shape == (N * C * H * W,)
    assert jnp.array_equal(y_full, ref_full)

    print("KERNEL_OK")
</pallas_src>

<mosaic_0001>
module attributes {stable_mosaic.version = 11 : i64} {
  func.func @_copy_kernel(%arg0: i32, %arg1: i32, %arg2: memref<1x2048xf32, #tpu.memory_space<vmem>>, %arg3: memref<1x2048xf32, #tpu.memory_space<vmem>>) attributes {dimension_semantics = [#tpu.dimension_semantics<parallel>, #tpu.dimension_semantics<parallel>], iteration_bounds = array<i64: 1, 1>, scalar_prefetch = 0 : i64, scratch_operands = 0 : i64, tpu.core_type = #tpu.core_type<tc>, window_params = [{transform_indices = @transform_0, window_bounds = array<i64: 1, 2048>}, {transform_indices = @transform_1, window_bounds = array<i64: 1, 2048>}]} {
    %c0 = arith.constant 0 : index
    %c0_0 = arith.constant 0 : index
    %0 = vector.load %arg2[%c0, %c0_0] : memref<1x2048xf32, #tpu.memory_space<vmem>>, vector<1x2048xf32>
    %c0_1 = arith.constant 0 : index
    %c0_2 = arith.constant 0 : index
    %1 = vector.load %arg3[%c0_1, %c0_2] : memref<1x2048xf32, #tpu.memory_space<vmem>>, vector<1x2048xf32>
    tpu.vector_store %arg3[%c0_1, %c0_2], %0 {strides = array<i32>} : memref<1x2048xf32, #tpu.memory_space<vmem>>, vector<1x2048xf32>,
    return
  }
  func.func @transform_0(%arg0: i32, %arg1: i32) -> (i32, i32) {
    %c0_i32 = arith.constant 0 : i32
    return %arg0, %arg1 : i32, i32
  }
  func.func @transform_1(%arg0: i32, %arg1: i32) -> (i32, i32) {
    %c0_i32 = arith.constant 0 : i32
    return %arg0, %arg1 : i32, i32
  }
}

</mosaic_0001>

<bundles_post_ra>
// kernel: tpu_custom_call.1
= control target key start
LH: loop header
LB: loop body
LE: loop exit
PB: predicated region body
PF: predicated region fallthrough
CT: control target
= control target key end

     0   :  { %6 = vsyncpa [#allocation3], 0  ;;  %s116_s0 = inlined_call_operand.hbm [shape: f32[1,2048], index: 0, kind: input, shape index: {}, may-alias: {0,1}]   ;;  %s117_s1 = inlined_call_operand.hbm [shape: f32[1,2048], index: 1, kind: output, shape index: {}, may-alias: {0,1}]  }
   0x1   :  { %7 = vsyncpa [#allocation4], 0  ;;  %s13_s8 = sshll.u32 %s116_s0, 4  ;;  %s98_s9 = smov [#allocation2]   ;;  %s14_s8 = int_to_ptr.hbm [resolvable:$true] %s13_s8 }
   0x2   :  { %s15_s10 = sshll.u32 %s98_s9, 4  ;;  %s16_s10 = int_to_ptr.vmem [resolvable:$true] %s15_s10 }
   0x3   :  { %18 = dma.hbm_to_vmem [thread:$0]  %s14_s8, 256, %s16_s10, [#allocation3]  }
   0x4   :  { %94 = dma.done.wait [#allocation3], 256  }
   0x5   :  { %95 = vsyncadd [#allocation3], 4294967040  ;;  %s99_s11 = smov [#allocation5]   ;;  %s34_s15 = sshll.u32 %s117_s1, 4  ;;  %v23_v0 = vld [vmem:[#allocation2] sm:$0xff]  ;;  %v24_v1 = vld [vmem:[#allocation2 + $0x8] sm:$0xff]  ;;  %s35_s15 = int_to_ptr.hbm [resolvable:$true] %s34_s15 }
   0x6   :  { %s32_s12 = sshll.u32 %s99_s11, 4  ;;  %25 = vst [vmem:[#allocation5] sm:$0xff] %v23_v0  ;;  %s33_s12 = int_to_ptr.vmem [resolvable:$true] %s32_s12 }
   0x7   :  { %26 = vst [vmem:[#allocation5 + $0x8] sm:$0xff] %v24_v1 }
   0x8   :  { %37 = dma.vmem_to_hbm [thread:$0]  %s33_s12, 256, %s35_s15, [#allocation4]  }
   0x9   :  { %96 = dma.done.wait [#allocation4], 256  }
   0xa   :  { %97 = vsyncadd [#allocation4], 4294967040 }
   0xb   :  { %42 = vsyncpa [#allocation3], 1 }
   0xc   :  { %43 = vsyncpa [#allocation4], 1 }

</bundles_post_ra>
